<compile_context>
chip_gen: v5e
topology: v5e:2x2
jax: 0.10.0
libtpu: 0.0.40
codegen_flags: <defaults>
</compile_context>

<pallas_src>
import math

import jax
import jax.numpy as jnp
from jax.experimental import pallas as pl
from jax.experimental.pallas import tpu as pltpu


def mha_kernel(xq_ref, xkv_ref, wq_ref, wk_ref, wv_ref,
               bq_ref, bk_ref, bv_ref, wo_ref, bo_ref, o_ref):
    """One grid step = one (batch element, query tile).

    xq_ref  : (1, tq, D)   bf16   query rows of this tile
    xkv_ref : (1, S,  D)   bf16   full sequence (source of K/V)
    wq/wk/wv: (H, D, dh)   bf16   head-major projection weights (Wq pre-scaled)
    bq/bk/bv: (H, 1, dh)   f32    head-major biases (bq pre-scaled)
    wo_ref  : (H, dh, D)   bf16   head-major output-projection weights
    bo_ref  : (1, D)       f32
    o_ref   : (1, tq, D)
    """
    H, D, dh = wq_ref.shape
    tq = xq_ref.shape[1]
    S = xkv_ref.shape[1]

    # Broadcast activations over the head axis once (hoisted, not in a loop).
    xq = jnp.broadcast_to(xq_ref[0], (H, tq, D))
    xkv = jnp.broadcast_to(xkv_ref[0], (H, S, D))

    # Head-major projections: all heads in one batched MXU call each.
    # (1/sqrt(dh) already folded into wq/bq by the wrapper.)
    q = jnp.einsum('hsd,hde->hse', xq, wq_ref[...],
                   preferred_element_type=jnp.float32)
    q = (q + bq_ref[...]).astype(jnp.bfloat16)           # (H, tq, dh)
    k = jnp.einsum('hsd,hde->hse', xkv, wk_ref[...],
                   preferred_element_type=jnp.float32)
    k = (k + bk_ref[...]).astype(jnp.bfloat16)            # (H, S, dh)
    v = jnp.einsum('hsd,hde->hse', xkv, wv_ref[...],
                   preferred_element_type=jnp.float32)
    v = (v + bv_ref[...]).astype(jnp.bfloat16)             # (H, S, dh)

    # Scaled dot-product attention, batched over heads; no explicit transpose.
    s = jnp.einsum('hqd,hkd->hqk', q, k,
                   preferred_element_type=jnp.float32)     # (H, tq, S)
    s = s - jnp.max(s, axis=-1, keepdims=True)             # stable softmax
    p = jnp.exp(s)                                         # unnormalized
    l = jnp.sum(p, axis=-1, keepdims=True)                 # (H, tq, 1)

    ctx = jnp.einsum('hqk,hkd->hqd', p.astype(jnp.bfloat16), v,
                     preferred_element_type=jnp.float32)   # (H, tq, dh)
    # Deferred softmax normalization (O(S*dh) VPU work, reciprocal on EUP).
    ctx = (ctx * pl.reciprocal(l, approx=True)).astype(jnp.bfloat16)

    # Output projection with head merge folded into MXU accumulation
    # (replaces lane-dim concatenate + single big dot).
    acc = jnp.zeros((tq, D), jnp.float32)
    for h in range(H):  # small static loop; one (tq,dh)x(dh,D) dot per head
        acc = acc + jnp.dot(ctx[h], wo_ref[h],
                            preferred_element_type=jnp.float32)
    o_ref[0] = (acc + bo_ref[...]).astype(o_ref.dtype)


def multi_head_attention(x, w_qkv, b_qkv, w_out, b_out, *, n_heads,
                         q_tile=None):
    """x: (B, S, D); w_qkv: (D, 3D); b_qkv: (3D,); w_out: (D, D); b_out: (D,)."""
    B, S, D = x.shape
    H = n_heads
    assert D % H == 0
    dh = D // H
    scale = 1.0 / math.sqrt(dh)

    # Pick a query tile that divides S (multiple of 8 when tiling).
    if q_tile is None:
        q_tile = S
        for cand in (512, 256, 128):
            if S > cand and S % cand == 0:
                q_tile = cand
                break
    assert S % q_tile == 0
    nq = S // q_tile

    # --- wrapper-side weight preparation (one-time layout plumbing) ---
    wq, wk, wv = w_qkv[:, :D], w_qkv[:, D:2 * D], w_qkv[:, 2 * D:]
    bq, bk, bv = b_qkv[:D], b_qkv[D:2 * D], b_qkv[2 * D:]

    def head_major_w(w):          # (D, D) -> (H, D, dh)
        return w.reshape(D, H, dh).transpose(1, 0, 2)

    def head_major_b(b):          # (D,) -> (H, 1, dh)
        return b.reshape(H, dh)[:, None, :]

    wq_h = (head_major_w(wq) * scale).astype(jnp.bfloat16)   # fold 1/sqrt(dh)
    wk_h = head_major_w(wk).astype(jnp.bfloat16)
    wv_h = head_major_w(wv).astype(jnp.bfloat16)
    bq_h = (head_major_b(bq) * scale).astype(jnp.float32)
    bk_h = head_major_b(bk).astype(jnp.float32)
    bv_h = head_major_b(bv).astype(jnp.float32)

    wo_h = w_out.reshape(H, dh, D).astype(jnp.bfloat16)       # (H, dh, D)
    bo = b_out.reshape(1, D).astype(jnp.float32)

    xb = x.astype(jnp.bfloat16)

    w_full = lambda shape: pl.BlockSpec(shape, lambda b, qi: (0,) * len(shape))

    return pl.pallas_call(
        mha_kernel,
        out_shape=jax.ShapeDtypeStruct((B, S, D), x.dtype),
        grid_spec=pltpu.PrefetchScalarGridSpec(
            num_scalar_prefetch=0,
            grid=(B, nq),
            in_specs=[
                pl.BlockSpec((1, q_tile, D), lambda b, qi: (b, qi, 0)),  # q rows
                pl.BlockSpec((1, S, D), lambda b, qi: (b, 0, 0)),        # kv rows
                w_full((H, D, dh)),   # wq (pre-scaled)
                w_full((H, D, dh)),   # wk
                w_full((H, D, dh)),   # wv
                w_full((H, 1, dh)),   # bq (pre-scaled)
                w_full((H, 1, dh)),   # bk
                w_full((H, 1, dh)),   # bv
                w_full((H, dh, D)),   # wo
                w_full((1, D)),       # bo
            ],
            out_specs=pl.BlockSpec((1, q_tile, D), lambda b, qi: (b, qi, 0)),
        ),
        compiler_params=pltpu.CompilerParams(
            dimension_semantics=("parallel", "parallel"),
            vmem_limit_bytes=32 * 1024 * 1024,
        ),
    )(xb, xb, wq_h, wk_h, wv_h, bq_h, bk_h, bv_h, wo_h, bo)


def reference_mha(x, w_qkv, b_qkv, w_out, b_out, *, n_heads):
    """Pure-JAX f32 reference mirroring the PyTorch forward (eval mode)."""
    B, S, D = x.shape
    dh = D // n_heads
    qkv = x @ w_qkv + b_qkv                      # (B, S, 3D)
    q, k, v = qkv[..., :D], qkv[..., D:2 * D], qkv[..., 2 * D:]

    def split(t):  # (B, S, D) -> (B, H, S, dh)
        return t.reshape(B, S, n_heads, dh).transpose(0, 2, 1, 3)

    q, k, v = split(q), split(k), split(v)
    scores = jnp.einsum("bhqd,bhkd->bhqk", q, k) / math.sqrt(dh)
    scores = jax.nn.softmax(scores, axis=-1)
    ctx = jnp.einsum("bhqk,bhkd->bhqd", scores, v)
    ctx = ctx.transpose(0, 2, 1, 3).reshape(B, S, D)
    return ctx @ w_out + b_out


if __name__ == "__main__":
    B, S, D, H = 2, 8, 32, 4   # batch, seq, hidden, heads  (D % H == 0)

    key = jax.random.PRNGKey(0)
    kx, k1, k2, k3, k4 = jax.random.split(key, 5)

    # Deterministic parameter init (PyTorch-Linear-style uniform bounds).
    bound = 1.0 / math.sqrt(D)
    x = jax.random.normal(kx, (B, S, D), dtype=jnp.float32)
    w_qkv = jax.random.uniform(k1, (D, 3 * D), jnp.float32, -bound, bound)
    b_qkv = jax.random.uniform(k2, (3 * D,), jnp.float32, -bound, bound)
    w_out = jax.random.uniform(k3, (D, D), jnp.float32, -bound, bound)
    b_out = jax.random.uniform(k4, (D,), jnp.float32, -bound, bound)

    out = multi_head_attention(x, w_qkv, b_qkv, w_out, b_out, n_heads=H)
    out = jax.block_until_ready(out)

    ref = reference_mha(x, w_qkv, b_qkv, w_out, b_out, n_heads=H)
    assert out.shape == (B, S, D)
    # bf16 matmul operands with f32 accumulation -> relaxed tolerance.
    max_err = float(jnp.max(jnp.abs(out - ref)))
    assert jnp.allclose(out, ref, atol=2e-2, rtol=2e-2), (
        f"mismatch vs reference (max abs err {max_err})")

    print("KERNEL_OK")
</pallas_src>

<mosaic_0001>
module attributes {stable_mosaic.version = 11 : i64} {
  func.func @mha_kernel(%arg0: i32, %arg1: i32, %arg2: memref<1x8x32xbf16, #tpu.memory_space<vmem>>, %arg3: memref<1x8x32xbf16, #tpu.memory_space<vmem>>, %arg4: memref<4x32x8xbf16, #tpu.memory_space<vmem>>, %arg5: memref<4x32x8xbf16, #tpu.memory_space<vmem>>, %arg6: memref<4x32x8xbf16, #tpu.memory_space<vmem>>, %arg7: memref<4x1x8xf32, #tpu.memory_space<vmem>>, %arg8: memref<4x1x8xf32, #tpu.memory_space<vmem>>, %arg9: memref<4x1x8xf32, #tpu.memory_space<vmem>>, %arg10: memref<4x8x32xbf16, #tpu.memory_space<vmem>>, %arg11: memref<1x32xf32, #tpu.memory_space<vmem>>, %arg12: memref<1x8x32xf32, #tpu.memory_space<vmem>>) attributes {dimension_semantics = [#tpu.dimension_semantics<parallel>, #tpu.dimension_semantics<parallel>], iteration_bounds = array<i64: 2, 1>, scalar_prefetch = 0 : i64, scratch_operands = 0 : i64, tpu.core_type = #tpu.core_type<tc>, window_params = [{transform_indices = @transform_0, window_bounds = array<i64: 1, 8, 32>}, {transform_indices = @transform_1, window_bounds = array<i64: 1, 8, 32>}, {pipeline_mode = #tpu.pipeline_mode<synchronous>, transform_indices = @transform_2, window_bounds = array<i64: 4, 32, 8>}, {pipeline_mode = #tpu.pipeline_mode<synchronous>, transform_indices = @transform_3, window_bounds = array<i64: 4, 32, 8>}, {pipeline_mode = #tpu.pipeline_mode<synchronous>, transform_indices = @transform_4, window_bounds = array<i64: 4, 32, 8>}, {pipeline_mode = #tpu.pipeline_mode<synchronous>, transform_indices = @transform_5, window_bounds = array<i64: 4, 1, 8>}, {pipeline_mode = #tpu.pipeline_mode<synchronous>, transform_indices = @transform_6, window_bounds = array<i64: 4, 1, 8>}, {pipeline_mode = #tpu.pipeline_mode<synchronous>, transform_indices = @transform_7, window_bounds = array<i64: 4, 1, 8>}, {pipeline_mode = #tpu.pipeline_mode<synchronous>, transform_indices = @transform_8, window_bounds = array<i64: 4, 8, 32>}, {pipeline_mode = #tpu.pipeline_mode<synchronous>, transform_indices = @transform_9, window_bounds = array<i64: 1, 32>}, {transform_indices = @transform_10, window_bounds = array<i64: 1, 8, 32>}]} {
    %c0 = arith.constant 0 : index
    %c0_0 = arith.constant 0 : index
    %c0_1 = arith.constant 0 : index
    %0 = vector.load %arg2[%c0, %c0_0, %c0_1] : memref<1x8x32xbf16, #tpu.memory_space<vmem>>, vector<1x8x32xbf16>
    %1 = vector.shape_cast %0 : vector<1x8x32xbf16> to vector<8x32xbf16>
    %2 = vector.shape_cast %1 : vector<8x32xbf16> to vector<1x8x32xbf16>
    %3 = vector.broadcast %2 : vector<1x8x32xbf16> to vector<4x8x32xbf16>
    %c0_2 = arith.constant 0 : index
    %c0_3 = arith.constant 0 : index
    %c0_4 = arith.constant 0 : index
    %4 = vector.load %arg3[%c0_2, %c0_3, %c0_4] : memref<1x8x32xbf16, #tpu.memory_space<vmem>>, vector<1x8x32xbf16>
    %5 = vector.shape_cast %4 : vector<1x8x32xbf16> to vector<8x32xbf16>
    %6 = vector.shape_cast %5 : vector<8x32xbf16> to vector<1x8x32xbf16>
    %7 = vector.broadcast %6 : vector<1x8x32xbf16> to vector<4x8x32xbf16>
    %c0_5 = arith.constant 0 : index
    %c0_6 = arith.constant 0 : index
    %c0_7 = arith.constant 0 : index
    %8 = vector.load %arg4[%c0_5, %c0_6, %c0_7] : memref<4x32x8xbf16, #tpu.memory_space<vmem>>, vector<4x32x8xbf16>
    "tpu.trace_start"() <{level = 10 : i32, message = "hsd,hde->hse"}> : () -> ()
    %cst = arith.constant dense<0.000000e+00> : vector<4x8x8xf32>
    %9 = tpu.matmul %3, %8, %cst {dimension_numbers = #tpu.dot_dimension_numbers<[2], [1], [1], [2], [0, 0, 0, 1, 1, 2], [0], [0]>} : vector<4x8x32xbf16>, vector<4x32x8xbf16>, vector<4x8x8xf32> -> vector<4x8x8xf32>
    "tpu.trace_stop"() : () -> ()
    %c0_8 = arith.constant 0 : index
    %c0_9 = arith.constant 0 : index
    %c0_10 = arith.constant 0 : index
    %10 = vector.load %arg7[%c0_8, %c0_9, %c0_10] : memref<4x1x8xf32, #tpu.memory_space<vmem>>, vector<4x1x8xf32>
    %11 = vector.broadcast %10 : vector<4x1x8xf32> to vector<4x8x8xf32>
    %12 = arith.addf %9, %11 : vector<4x8x8xf32>
    %13 = arith.truncf %12 : vector<4x8x8xf32> to vector<4x8x8xbf16>
    %c0_11 = arith.constant 0 : index
    %c0_12 = arith.constant 0 : index
    %c0_13 = arith.constant 0 : index
    %14 = vector.load %arg5[%c0_11, %c0_12, %c0_13] : memref<4x32x8xbf16, #tpu.memory_space<vmem>>, vector<4x32x8xbf16>
    "tpu.trace_start"() <{level = 10 : i32, message = "hsd,hde->hse"}> : () -> ()
    %cst_14 = arith.constant dense<0.000000e+00> : vector<4x8x8xf32>
    %15 = tpu.matmul %7, %14, %cst_14 {dimension_numbers = #tpu.dot_dimension_numbers<[2], [1], [1], [2], [0, 0, 0, 1, 1, 2], [0], [0]>} : vector<4x8x32xbf16>, vector<4x32x8xbf16>, vector<4x8x8xf32> -> vector<4x8x8xf32>
    "tpu.trace_stop"() : () -> ()
    %c0_15 = arith.constant 0 : index
    %c0_16 = arith.constant 0 : index
    %c0_17 = arith.constant 0 : index
    %16 = vector.load %arg8[%c0_15, %c0_16, %c0_17] : memref<4x1x8xf32, #tpu.memory_space<vmem>>, vector<4x1x8xf32>
    %17 = vector.broadcast %16 : vector<4x1x8xf32> to vector<4x8x8xf32>
    %18 = arith.addf %15, %17 : vector<4x8x8xf32>
    %19 = arith.truncf %18 : vector<4x8x8xf32> to vector<4x8x8xbf16>
    %c0_18 = arith.constant 0 : index
    %c0_19 = arith.constant 0 : index
    %c0_20 = arith.constant 0 : index
    %20 = vector.load %arg6[%c0_18, %c0_19, %c0_20] : memref<4x32x8xbf16, #tpu.memory_space<vmem>>, vector<4x32x8xbf16>
    "tpu.trace_start"() <{level = 10 : i32, message = "hsd,hde->hse"}> : () -> ()
    %cst_21 = arith.constant dense<0.000000e+00> : vector<4x8x8xf32>
    %21 = tpu.matmul %7, %20, %cst_21 {dimension_numbers = #tpu.dot_dimension_numbers<[2], [1], [1], [2], [0, 0, 0, 1, 1, 2], [0], [0]>} : vector<4x8x32xbf16>, vector<4x32x8xbf16>, vector<4x8x8xf32> -> vector<4x8x8xf32>
    "tpu.trace_stop"() : () -> ()
    %c0_22 = arith.constant 0 : index
    %c0_23 = arith.constant 0 : index
    %c0_24 = arith.constant 0 : index
    %22 = vector.load %arg9[%c0_22, %c0_23, %c0_24] : memref<4x1x8xf32, #tpu.memory_space<vmem>>, vector<4x1x8xf32>
    %23 = vector.broadcast %22 : vector<4x1x8xf32> to vector<4x8x8xf32>
    %24 = arith.addf %21, %23 : vector<4x8x8xf32>
    %25 = arith.truncf %24 : vector<4x8x8xf32> to vector<4x8x8xbf16>
    "tpu.trace_start"() <{level = 10 : i32, message = "hqd,hkd->hqk"}> : () -> ()
    %cst_25 = arith.constant dense<0.000000e+00> : vector<4x8x8xf32>
    %26 = tpu.matmul %13, %19, %cst_25 {dimension_numbers = #tpu.dot_dimension_numbers<[2], [2], [1], [1], [0, 0, 0, 1, 1, 1], [0], [0]>} : vector<4x8x8xbf16>, vector<4x8x8xbf16>, vector<4x8x8xf32> -> vector<4x8x8xf32>
    "tpu.trace_stop"() : () -> ()
    %cst_26 = arith.constant dense<0xFF800000> : vector<4x8xf32>
    %27 = vector.multi_reduction <maximumf>, %26, %cst_26 [2] : vector<4x8x8xf32> to vector<4x8xf32>
    %28 = vector.shape_cast %27 : vector<4x8xf32> to vector<4x8x1xf32>
    %29 = vector.broadcast %28 : vector<4x8x1xf32> to vector<4x8x8xf32>
    %30 = arith.subf %26, %29 : vector<4x8x8xf32>
    %31 = math.exp %30 : vector<4x8x8xf32>
    %cst_27 = arith.constant dense<0.000000e+00> : vector<4x8xf32>
    %32 = vector.multi_reduction <add>, %31, %cst_27 [2] : vector<4x8x8xf32> to vector<4x8xf32>
    %33 = vector.shape_cast %32 : vector<4x8xf32> to vector<4x8x1xf32>
    %34 = arith.truncf %31 : vector<4x8x8xf32> to vector<4x8x8xbf16>
    "tpu.trace_start"() <{level = 10 : i32, message = "hqk,hkd->hqd"}> : () -> ()
    %cst_28 = arith.constant dense<0.000000e+00> : vector<4x8x8xf32>
    %35 = tpu.matmul %34, %25, %cst_28 {dimension_numbers = #tpu.dot_dimension_numbers<[2], [1], [1], [2], [0, 0, 0, 1, 1, 2], [0], [0]>} : vector<4x8x8xbf16>, vector<4x8x8xbf16>, vector<4x8x8xf32> -> vector<4x8x8xf32>
    "tpu.trace_stop"() : () -> ()
    %36 = tpu.reciprocal %33 {approx = true} : vector<4x8x1xf32> -> vector<4x8x1xf32>
    %37 = vector.broadcast %36 : vector<4x8x1xf32> to vector<4x8x8xf32>
    %38 = arith.mulf %35, %37 : vector<4x8x8xf32>
    %39 = arith.truncf %38 : vector<4x8x8xf32> to vector<4x8x8xbf16>
    %cst_29 = arith.constant 0.000000e+00 : f32
    %40 = vector.broadcast %cst_29 : f32 to vector<8x32xf32>
    %41 = vector.extract_strided_slice %39 {offsets = [0, 0, 0], sizes = [1, 8, 8], strides = [1, 1, 1]} : vector<4x8x8xbf16> to vector<1x8x8xbf16>
    %42 = vector.shape_cast %41 : vector<1x8x8xbf16> to vector<8x8xbf16>
    %c0_30 = arith.constant 0 : index
    %c0_31 = arith.constant 0 : index
    %c0_32 = arith.constant 0 : index
    %43 = vector.load %arg10[%c0_30, %c0_31, %c0_32] : memref<4x8x32xbf16, #tpu.memory_space<vmem>>, vector<1x8x32xbf16>
    %44 = vector.shape_cast %43 : vector<1x8x32xbf16> to vector<8x32xbf16>
    %cst_33 = arith.constant dense<0.000000e+00> : vector<8x32xf32>
    %45 = tpu.matmul %42, %44, %cst_33 {dimension_numbers = #tpu.dot_dimension_numbers<[1], [0], [0], [1], [0, 0, 1, 1], [], []>} : vector<8x8xbf16>, vector<8x32xbf16>, vector<8x32xf32> -> vector<8x32xf32>
    %46 = arith.addf %40, %45 : vector<8x32xf32>
    %47 = vector.extract_strided_slice %39 {offsets = [1, 0, 0], sizes = [1, 8, 8], strides = [1, 1, 1]} : vector<4x8x8xbf16> to vector<1x8x8xbf16>
    %48 = vector.shape_cast %47 : vector<1x8x8xbf16> to vector<8x8xbf16>
    %c1 = arith.constant 1 : index
    %c0_34 = arith.constant 0 : index
    %c0_35 = arith.constant 0 : index
    %49 = vector.load %arg10[%c1, %c0_34, %c0_35] : memref<4x8x32xbf16, #tpu.memory_space<vmem>>, vector<1x8x32xbf16>
    %50 = vector.shape_cast %49 : vector<1x8x32xbf16> to vector<8x32xbf16>
    %cst_36 = arith.constant dense<0.000000e+00> : vector<8x32xf32>
    %51 = tpu.matmul %48, %50, %cst_36 {dimension_numbers = #tpu.dot_dimension_numbers<[1], [0], [0], [1], [0, 0, 1, 1], [], []>} : vector<8x8xbf16>, vector<8x32xbf16>, vector<8x32xf32> -> vector<8x32xf32>
    %52 = arith.addf %46, %51 : vector<8x32xf32>
    %53 = vector.extract_strided_slice %39 {offsets = [2, 0, 0], sizes = [1, 8, 8], strides = [1, 1, 1]} : vector<4x8x8xbf16> to vector<1x8x8xbf16>
    %54 = vector.shape_cast %53 : vector<1x8x8xbf16> to vector<8x8xbf16>
    %c2 = arith.constant 2 : index
    %c0_37 = arith.constant 0 : index
    %c0_38 = arith.constant 0 : index
    %55 = vector.load %arg10[%c2, %c0_37, %c0_38] : memref<4x8x32xbf16, #tpu.memory_space<vmem>>, vector<1x8x32xbf16>
    %56 = vector.shape_cast %55 : vector<1x8x32xbf16> to vector<8x32xbf16>
    %cst_39 = arith.constant dense<0.000000e+00> : vector<8x32xf32>
    %57 = tpu.matmul %54, %56, %cst_39 {dimension_numbers = #tpu.dot_dimension_numbers<[1], [0], [0], [1], [0, 0, 1, 1], [], []>} : vector<8x8xbf16>, vector<8x32xbf16>, vector<8x32xf32> -> vector<8x32xf32>
    %58 = arith.addf %52, %57 : vector<8x32xf32>
    %59 = vector.extract_strided_slice %39 {offsets = [3, 0, 0], sizes = [1, 8, 8], strides = [1, 1, 1]} : vector<4x8x8xbf16> to vector<1x8x8xbf16>
    %60 = vector.shape_cast %59 : vector<1x8x8xbf16> to vector<8x8xbf16>
    %c3 = arith.constant 3 : index
    %c0_40 = arith.constant 0 : index
    %c0_41 = arith.constant 0 : index
    %61 = vector.load %arg10[%c3, %c0_40, %c0_41] : memref<4x8x32xbf16, #tpu.memory_space<vmem>>, vector<1x8x32xbf16>
    %62 = vector.shape_cast %61 : vector<1x8x32xbf16> to vector<8x32xbf16>
    %cst_42 = arith.constant dense<0.000000e+00> : vector<8x32xf32>
    %63 = tpu.matmul %60, %62, %cst_42 {dimension_numbers = #tpu.dot_dimension_numbers<[1], [0], [0], [1], [0, 0, 1, 1], [], []>} : vector<8x8xbf16>, vector<8x32xbf16>, vector<8x32xf32> -> vector<8x32xf32>
    %64 = arith.addf %58, %63 : vector<8x32xf32>
    %c0_43 = arith.constant 0 : index
    %c0_44 = arith.constant 0 : index
    %65 = vector.load %arg11[%c0_43, %c0_44] : memref<1x32xf32, #tpu.memory_space<vmem>>, vector<1x32xf32>
    %66 = vector.broadcast %65 : vector<1x32xf32> to vector<8x32xf32>
    %67 = arith.addf %64, %66 : vector<8x32xf32>
    %c0_45 = arith.constant 0 : index
    %c0_46 = arith.constant 0 : index
    %c0_47 = arith.constant 0 : index
    %68 = vector.load %arg12[%c0_45, %c0_46, %c0_47] : memref<1x8x32xf32, #tpu.memory_space<vmem>>, vector<1x8x32xf32>
    %69 = vector.shape_cast %68 : vector<1x8x32xf32> to vector<8x32xf32>
    %70 = vector.shape_cast %67 : vector<8x32xf32> to vector<1x8x32xf32>
    tpu.vector_store %arg12[%c0_45, %c0_46, %c0_47], %70 {strides = array<i32>} : memref<1x8x32xf32, #tpu.memory_space<vmem>>, vector<1x8x32xf32>,
    return
  }
  func.func @transform_0(%arg0: i32, %arg1: i32) -> (i32, i32, i32) {
    %c0_i32 = arith.constant 0 : i32
    %c0_i32_0 = arith.constant 0 : i32
    return %arg0, %arg1, %c0_i32 : i32, i32, i32
  }
  func.func @transform_1(%arg0: i32, %arg1: i32) -> (i32, i32, i32) {
    %c0_i32 = arith.constant 0 : i32
    %c0_i32_0 = arith.constant 0 : i32
    %c0_i32_1 = arith.constant 0 : i32
    return %arg0, %c0_i32, %c0_i32_0 : i32, i32, i32
  }
  func.func @transform_2(%arg0: i32, %arg1: i32) -> (i32, i32, i32) {
    %c0_i32 = arith.constant 0 : i32
    %c0_i32_0 = arith.constant 0 : i32
    %c0_i32_1 = arith.constant 0 : i32
    %c0_i32_2 = arith.constant 0 : i32
    return %c0_i32, %c0_i32_0, %c0_i32_1 : i32, i32, i32
  }
  func.func @transform_3(%arg0: i32, %arg1: i32) -> (i32, i32, i32) {
    %c0_i32 = arith.constant 0 : i32
    %c0_i32_0 = arith.constant 0 : i32
    %c0_i32_1 = arith.constant 0 : i32
    %c0_i32_2 = arith.constant 0 : i32
    return %c0_i32, %c0_i32_0, %c0_i32_1 : i32, i32, i32
  }
  func.func @transform_4(%arg0: i32, %arg1: i32) -> (i32, i32, i32) {
    %c0_i32 = arith.constant 0 : i32
    %c0_i32_0 = arith.constant 0 : i32
    %c0_i32_1 = arith.constant 0 : i32
    %c0_i32_2 = arith.constant 0 : i32
    return %c0_i32, %c0_i32_0, %c0_i32_1 : i32, i32, i32
  }
  func.func @transform_5(%arg0: i32, %arg1: i32) -> (i32, i32, i32) {
    %c0_i32 = arith.constant 0 : i32
    %c0_i32_0 = arith.constant 0 : i32
    %c0_i32_1 = arith.constant 0 : i32
    %c0_i32_2 = arith.constant 0 : i32
    return %c0_i32, %c0_i32_0, %c0_i32_1 : i32, i32, i32
  }
  func.func @transform_6(%arg0: i32, %arg1: i32) -> (i32, i32, i32) {
    %c0_i32 = arith.constant 0 : i32
    %c0_i32_0 = arith.constant 0 : i32
    %c0_i32_1 = arith.constant 0 : i32
    %c0_i32_2 = arith.constant 0 : i32
    return %c0_i32, %c0_i32_0, %c0_i32_1 : i32, i32, i32
  }
  func.func @transform_7(%arg0: i32, %arg1: i32) -> (i32, i32, i32) {
    %c0_i32 = arith.constant 0 : i32
    %c0_i32_0 = arith.constant 0 : i32
    %c0_i32_1 = arith.constant 0 : i32
    %c0_i32_2 = arith.constant 0 : i32
    return %c0_i32, %c0_i32_0, %c0_i32_1 : i32, i32, i32
  }
  func.func @transform_8(%arg0: i32, %arg1: i32) -> (i32, i32, i32) {
    %c0_i32 = arith.constant 0 : i32
    %c0_i32_0 = arith.constant 0 : i32
    %c0_i32_1 = arith.constant 0 : i32
    %c0_i32_2 = arith.constant 0 : i32
    return %c0_i32, %c0_i32_0, %c0_i32_1 : i32, i32, i32
  }
  func.func @transform_9(%arg0: i32, %arg1: i32) -> (i32, i32) {
    %c0_i32 = arith.constant 0 : i32
    %c0_i32_0 = arith.constant 0 : i32
    %c0_i32_1 = arith.constant 0 : i32
    return %c0_i32, %c0_i32_0 : i32, i32
  }
  func.func @transform_10(%arg0: i32, %arg1: i32) -> (i32, i32, i32) {
    %c0_i32 = arith.constant 0 : i32
    %c0_i32_0 = arith.constant 0 : i32
    return %arg0, %arg1, %c0_i32 : i32, i32, i32
  }
}

</mosaic_0001>

<bundles_post_ra>
// kernel: tpu_custom_call.1
= control target key start
LH: loop header
LB: loop body
LE: loop exit
PB: predicated region body
PF: predicated region fallthrough
CT: control target
= control target key end

     0   :  { %15 = vsyncpa [#allocation3], 0  ;;  %s1861_s0 = inlined_call_operand.vmem [shape: bf16[2,8,32], index: 0, kind: input, shape index: {}]   ;;  %s1862_s1 = inlined_call_operand.vmem [shape: bf16[2,8,32], index: 1, kind: input, shape index: {}]   ;;  %s1863_s2 = inlined_call_operand.vmem [shape: bf16[4,32,8], index: 2, kind: input, shape index: {}]   ;;  %s1864_s3 = inlined_call_operand.vmem [shape: bf16[4,32,8], index: 3, kind: input, shape index: {}]   ;;  %s1865_s4 = inlined_call_operand.vmem [shape: bf16[4,32,8], index: 4, kind: input, shape index: {}]   ;;  %s1866_s5 = inlined_call_operand.vmem [shape: f32[4,1,8], index: 5, kind: input, shape index: {}]   ;;  %s1867_s6 = inlined_call_operand.vmem [shape: f32[4,1,8], index: 6, kind: input, shape index: {}]   ;;  %s1868_s7 = inlined_call_operand.vmem [shape: f32[4,1,8], index: 7, kind: input, shape index: {}]   ;;  %s1869_s8 = inlined_call_operand.vmem [shape: bf16[4,8,32], index: 8, kind: input, shape index: {}]   ;;  %s1870_s9 = inlined_call_operand.vmem [shape: f32[1,32], index: 9, kind: input, shape index: {}]   ;;  %s1871_s10 = inlined_call_operand.hbm [shape: f32[2,8,32], index: 10, kind: output, shape index: {}]  }
   0x1   :  { %17 = vsyncpa [#allocation3 + $0x1], 0  ;;  %s1590_s13 = smov 0   ;;  %s1592_s14 = smov 0  }
   0x2   :  { %s1594_s15 = smov 0   ;;  %s1596_s16 = smov 0  }
   0x3   :  { %s1598_s17 = smov 0   ;;  %s1600_s18 = smov 0  }
   0x4 LB: > { %1875 = sst [smem:[#allocation5_spill]] %s1521_s15  ;;  %s1212_s19 = sadd.s32 4294967295, %s1533_s18   ;;  %s1533_s18 = sphi %s1600_s18, %s23_s18   ;;  %s1529_s17 = sphi %s1598_s17, %s1884_s17   ;;  %s1525_s16 = sphi %s1596_s16, %s1883_s16   ;;  %s1521_s15 = sphi %s1594_s15, %s1882_s15   ;;  %s1517_s14 = sphi %s1592_s14, %s1886_s14   ;;  %s1513_s13 = sphi %s1590_s13, %s1885_s13  }
   0x5   : > { %1876 = sst [smem:[#allocation6_spill]] %s1529_s17  ;;  %s1213_s20 = sadd.s32 4294967294, %s1533_s18  }
   0x6   : > { %s35_s21 = sadd.s32 1, %s1529_s17  ;;  %s266_s22 = sadd.s32 1, %s1521_s15 }
   0x7   : > { %p37_p0 = scmp.ge.s32.totalorder %s35_s21, 2  ;;  %p276_p1 = scmp.ne.s32.totalorder %s1521_s15, %s1517_s14 }
   0x8   : > { %p277_p2 = scmp.eq.s32.totalorder %s1212_s19, 1  ;;  %p282_p3 = scmp.ne.s32.totalorder %s1517_s14, %s1513_s13 }
   0x9   : > { %s1888_s21 = smov (%p37_p0, %s35_s21), 0  ;;  %p283_p5 = scmp.eq.s32.totalorder %s1213_s20, 1 }
   0xa   : > { %1877 = sst [smem:[#allocation7_spill]] %s1888_s21  ;;  %p1630_p4 = por %p277_p2, %p276_p1 }
   0xb   : > { %s261_s24 = ssub.s32 %s1529_s17, %s1888_s21  ;;  %p1216_p6 = scmp.ge.s32.totalorder %s1533_s18, 1 }
   0xc   : > { %p264_p7 = scmp.eq.s32.totalorder %s261_s24, 0  ;;  %p1637_p8 = por %p283_p5, %p282_p3 }
   0xd   : > { %p342_p9 = scmp.lt.s32.totalorder %s1533_s18, 3 }
   0xe   : > { %s1643_s26 = scalar_select %p264_p7, %s1521_s15, %s266_s22  }
   0xf   : > { %p343_p10 = pnand %p1216_p6, %p342_p9 }
  0x10   : > { %1880 = sst [smem:[#allocation8_spill]] %s1643_s26  ;;  %p386_p11 = scmp.lt.s32.totalorder (!%p343_p10), %s1525_s16, 1 }
  0x11   : > { %346 = sbr.rel (%p343_p10) target bundleno = 738 (0x2e2), region = 60  ;;  %s1344_s17 = sshll.u32 (!%p343_p10), %s1525_s16, 3 }
  0x12   : > { %s1124_s27 = scalar_lea.hbm (!%p343_p10), %s1871_s10, %s1344_s17 }
  0x16   : > { %v1348_v0 = vld [vmem:[%s1863_s2 + $0x8] sm:$0xff]  ;;  %v1350_v1 = vld [vmem:[%s1863_s2 + $0x18] sm:$0xff]  ;;  %v1347_v4 = vld [vmem:[%s1863_s2] sm:$0xff]  ;;  %s1665_s29 = scalar_select %p386_p11, %s1525_s16, 1  ;;  %vm444_vm0 = vcmask 261120   ;;  %vm815_vm1 = vcmask 64512  }
  0x17   : > { %v1352_v2 = vld [vmem:[%s1863_s2 + $0x28] sm:$0xff]  ;;  %v1354_v3 = vld [vmem:[%s1863_s2 + $0x38] sm:$0xff]  ;;  %454 = vmatpush.bf16.msra.mxu0 %v1348_v0  ;;  %479 = vmatpush.bf16.msra.mxu1 %v1350_v1  ;;  %v1349_v5 = vld [vmem:[%s1863_s2 + $0x10] sm:$0xff]  ;;  %vm935_vm2 = vcmask 1043456  }
  0x18   : > { %504 = vmatpush.bf16.msra.mxu2 %v1352_v2  ;;  %529 = vmatpush.bf16.msra.mxu3 %v1354_v3  ;;  %v1351_v6 = vld [vmem:[%s1863_s2 + $0x20] sm:$0xff]  ;;  %v1353_v7 = vld [vmem:[%s1863_s2 + $0x30] sm:$0xff]  ;;  %s1218_s20 = sshll.u32 %s1665_s29, 2  ;;  %v1356_v8 = vld [vmem:[%s1864_s3 + $0x8] sm:$0xff]  ;;  %s1128_s29 = sshll.u32 %s1124_s27, 4  ;;  %s1129_s29 = int_to_ptr.hbm [resolvable:$true] %s1128_s29 }
  0x19   : > { %v1358_v9 = vld [vmem:[%s1864_s3 + $0x18] sm:$0xff]  ;;  %s392_s26 = scalar_lea.vmem %s1861_s0, %s1218_s20  ;;  %v1360_v10 = vld [vmem:[%s1864_s3 + $0x28] sm:$0xff]  ;;  %v1355_v13 = vld [vmem:[%s1864_s3] sm:$0xff]  ;;  %s396_s30 = scalar_lea.vmem %s1862_s1, %s1218_s20 }
  0x1a   : > { %v1362_v11 = vld [vmem:[%s1864_s3 + $0x38] sm:$0xff]  ;;  %v398_v12 = vld [vmem:[%s392_s26] sm:$0xf]  ;;  %v1357_v14 = vld [vmem:[%s1864_s3 + $0x10] sm:$0xff]  ;;  %s383_s20 = sand.u32 1, %s1517_s14   ;;  %s1469_s19 = sshra.s32 %s1129_s29, 4  ;;  %s1470_s19 = int_to_ptr.hbm [resolvable:$true] %s1469_s19 }
  0x1b   : > { %455 = vmatpush.bf16.msra.mxu0 %v1347_v4  ;;  %480 = vmatpush.bf16.msra.mxu1 %v1349_v5  ;;  %v1359_v15 = vld [vmem:[%s1864_s3 + $0x20] sm:$0xff]  ;;  %v1361_v16 = vld [vmem:[%s1864_s3 + $0x30] sm:$0xff]  ;;  %v1368_v18 = vld [vmem:[%s1865_s4 + $0x28] sm:$0xff]  ;;  %s1217_s15 = sshll.u32 %s383_s20, 3  ;;  %s1113_s16 = scalar_lea.sflag [#allocation3], %s383_s20 }
  0x1c   : > { %505 = vmatpush.bf16.msra.mxu2 %v1351_v6  ;;  %530 = vmatpush.bf16.msra.mxu3 %v1353_v7  ;;  %v399_v17 = vld [vmem:[%s396_s30] sm:$0xf]  ;;  %v1364_v19 = vld [vmem:[%s1865_s4 + $0x8] sm:$0xff]  ;;  %v1366_v20 = vld [vmem:[%s1865_s4 + $0x18] sm:$0xff]  ;;  %s385_s11 = scalar_lea.vmem [#allocation2], %s1217_s15  ;;  %s1471_s22 = scalar_lea.hbm %s1470_s19, 8 }
  0x1d   : > { %v1367_v21 = vld [vmem:[%s1865_s4 + $0x20] sm:$0xff]  ;;  %v1365_v23 = vld [vmem:[%s1865_s4 + $0x10] sm:$0xff]  ;;  %v1370_v24 = vld [vmem:[%s1865_s4 + $0x38] sm:$0xff]  ;;  %s1126_s12 = sshll.u32 %s385_s11, 4  ;;  %p1472_p12 = scmp.ne.s32.totalorder %s1470_s19, %s1471_s22  ;;  %s1127_s12 = int_to_ptr.vmem [resolvable:$true] %s1126_s12 }
  0x1e   : > { %1228 = vmatmul.msk.bf16.vlgmr.msra.gmra.mxu0 %vm444_vm0, %v398_v12  ;;  %1237 = vmatmul.msk.bf16.vlgmr.msra.gmra.mxu1 %vm444_vm0, %v398_v12  ;;  %v1363_v22 = vld [vmem:[%s1865_s4] sm:$0xff]  ;;  %v1369_v25 = vld [vmem:[%s1865_s4 + $0x30] sm:$0xff]  ;;  %s1475_s15 = scalar_lea.hbm %s1871_s10, 16  ;;  %p1476_p1 = scmp.lt.s32.totalorder %s1470_s19, %s1871_s10 }
  0x1f   : > { %593 = vmatpush.bf16.msrb.mxu0 %v1356_v8  ;;  %618 = vmatpush.bf16.msrb.mxu1 %v1358_v9  ;;  %v1430_v32 = vld [vmem:[%s1867_s6] ss:$0 sm:$0xff]  ;;  %v1431_v33 = vld [vmem:[%s1867_s6 + $0x1] ss:$0 sm:$0xff]  ;;  %v1432_v44 = vld [vmem:[%s1867_s6 + $0x2] ss:$0 sm:$0xff]  ;;  %p1473_p13 = pnand %p1472_p12, %p1630_p4  ;;  %p1477_p2 = scmp.lt.s32.totalorder %s1475_s15, %s1471_s22 }
  0x20   : > { %1246 = vmatmul.msk.bf16.vlgmr.msra.gmra.mxu2 %vm444_vm0, %v398_v12  ;;  %1255 = vmatmul.msk.bf16.vlgmr.msra.gmra.mxu3 %vm444_vm0, %v398_v12  ;;  %v1427_v40 = vld [vmem:[%s1866_s5 + $0x1] ss:$0 sm:$0xff]  ;;  %v1426_v43 = vld [vmem:[%s1866_s5] ss:$0 sm:$0xff]  ;;  %v1433_v45 = vld [vmem:[%s1867_s6 + $0x3] ss:$0 sm:$0xff] }
  0x21   : > { %643 = vmatpush.bf16.msrb.mxu2 %v1360_v10  ;;  %668 = vmatpush.bf16.msrb.mxu3 %v1362_v11  ;;  %v1428_v57 = vld [vmem:[%s1866_s5 + $0x2] ss:$0 sm:$0xff]  ;;  %v1429_v58 = vld [vmem:[%s1866_s5 + $0x3] ss:$0 sm:$0xff]  ;;  %v1434_v6 = vld [vmem:[%s1868_s7] ss:$0 sm:$0xff]  ;;  %p1474_p0 = pneg %p1473_p13  ;;  %p1478_p3 = por %p1477_p2, %p1476_p1 }
  0x22   : > { %v1435_v7 = vld [vmem:[%s1868_s7 + $0x1] ss:$0 sm:$0xff]  ;;  %v1436_v12 = vld [vmem:[%s1868_s7 + $0x2] ss:$0 sm:$0xff] }
  0x23   : > { %594 = vmatpush.bf16.msrb.mxu0 %v1355_v13  ;;  %619 = vmatpush.bf16.msrb.mxu1 %v1357_v14  ;;  %p1479_p5 = pnand %p1478_p3, %p1474_p0 }
  0x25   : > { %644 = vmatpush.bf16.msrb.mxu2 %v1359_v15  ;;  %669 = vmatpush.bf16.msrb.mxu3 %v1361_v16 }
  0x27   : > { %729 = vmatpush.bf16.msra.mxu0 %v1364_v19  ;;  %754 = vmatpush.bf16.msra.mxu1 %v1366_v20 }
  0x29   : > { %779 = vmatpush.bf16.msra.mxu2 %v1368_v18  ;;  %804 = vmatpush.bf16.msra.mxu3 %v1370_v24 }
  0x2b   : > { %730 = vmatpush.bf16.msra.mxu0 %v1363_v22  ;;  %755 = vmatpush.bf16.msra.mxu1 %v1365_v23  ;;  %v1437_v23 = vld [vmem:[%s1868_s7 + $0x3] ss:$0 sm:$0xff] }
  0x2d   : > { %780 = vmatpush.bf16.msra.mxu2 %v1367_v21  ;;  %805 = vmatpush.bf16.msra.mxu3 %v1369_v25 }
  0x2e   : > { %1264 = vmatmul.msk.bf16.vlgmr.msrb.gmra.mxu0 %vm444_vm0, %v399_v17  ;;  %1273 = vmatmul.msk.bf16.vlgmr.msrb.gmra.mxu1 %vm444_vm0, %v399_v17 }
  0x30   : > { %1282 = vmatmul.msk.bf16.vlgmr.msrb.gmra.mxu2 %vm444_vm0, %v399_v17  ;;  %1291 = vmatmul.msk.bf16.vlgmr.msrb.gmra.mxu3 %vm444_vm0, %v399_v17 }
  0x3e   : > { %1300 = vmatmul.msk.bf16.vlgmr.msra.gmra.mxu0 %vm444_vm0, %v399_v17  ;;  %1309 = vmatmul.msk.bf16.vlgmr.msra.gmra.mxu1 %vm444_vm0, %v399_v17 }
  0x40   : > { %1318 = vmatmul.msk.bf16.vlgmr.msra.gmra.mxu2 %vm444_vm0, %v399_v17  ;;  %1327 = vmatmul.msk.bf16.vlgmr.msra.gmra.mxu3 %vm444_vm0, %v399_v17 }
  0x9b   : > { %v457_v26 = vpop.f32.mrf.mxu0  ;;  %v482_v27 = vpop.f32.mrf.mxu1 }
  0x9c   : > { %v483_v48 = vadd.f32 %v1427_v40, %v482_v27  ;;  %v458_v51 = vadd.f32 %v1426_v43, %v457_v26 }
  0x9e   : > { %v537_v56 = vpack.c.bf16 %v483_v48, %v483_v48  ;;  %v536_v61 = vpack.c.bf16 %v458_v51, %v458_v51 }
  0xa3   : > { %v507_v28 = vpop.f32.mrf.mxu2  ;;  %v532_v29 = vpop.f32.mrf.mxu3 }
  0xa4   : > { %v459_v30 = vpop.f32.mrf.mxu0  ;;  %v484_v31 = vpop.f32.mrf.mxu1  ;;  %v508_v0 = vadd.f32 %v1428_v57, %v507_v28  ;;  %v533_v1 = vadd.f32 %v1429_v58, %v532_v29 }
  0xa6   : > { %v538_v4 = vpack.c.bf16 %v508_v0, %v508_v0  ;;  %v539_v5 = vpack.c.bf16 %v533_v1, %v533_v1 }
  0xab   : > { %v509_v34 = vpop.f32.mrf.mxu2  ;;  %v534_v35 = vpop.f32.mrf.mxu3 }
  0xac   : > { %v596_v36 = vpop.f32.mrf.mxu0  ;;  %v621_v37 = vpop.f32.mrf.mxu1 }
  0xad   : > { %v597_v38 = vadd.f32 %v1430_v32, %v596_v36  ;;  %v622_v39 = vadd.f32 %v1431_v33, %v621_v37 }
  0xaf   : > { %v675_v41 = vpack.c.bf16 %v597_v38, %v597_v38  ;;  %v676_v42 = vpack.c.bf16 %v622_v39, %v622_v39 }
  0xb1   : > { %v820_v46 = vsel %vm815_vm1, %v675_v41, 0  ;;  %v839_v47 = vsel %vm815_vm1, %v676_v42, 0 }
  0xb2   : > { %829 = vmatpush.bf16.xpose.msrb.mxu0 %v820_v46  ;;  %848 = vmatpush.bf16.xpose.msrb.mxu1 %v839_v47 }
  0xb3   : > { %v646_v49 = vpop.f32.mrf.mxu2  ;;  %v671_v50 = vpop.f32.mrf.mxu3 }
  0xb4   : > { %v647_v52 = vadd.f32 %v1432_v44, %v646_v49  ;;  %v672_v53 = vadd.f32 %v1433_v45, %v671_v50  ;;  %v598_v54 = vpop.f32.mrf.mxu0  ;;  %v623_v55 = vpop.f32.mrf.mxu1 }
  0xb6   : > { %v677_v59 = vpack.c.bf16 %v647_v52, %v647_v52  ;;  %v678_v60 = vpack.c.bf16 %v672_v53, %v672_v53 }
  0xb8   : > { %v858_v62 = vsel %vm815_vm1, %v677_v59, 0  ;;  %v877_v63 = vsel %vm815_vm1, %v678_v60, 0 }
  0xb9   : > { %867 = vmatpush.bf16.xpose.msrb.mxu2 %v858_v62  ;;  %886 = vmatpush.bf16.xpose.msrb.mxu3 %v877_v63 }
  0xba   : > { %1328 = vmatmul.msk.bf16.vlgmr.msrb.gmra.mxu0 %vm815_vm1, %v536_v61  ;;  %1329 = vmatmul.msk.bf16.vlgmr.msrb.gmra.mxu1 %vm815_vm1, %v537_v56 }
  0xbb   : > { %v648_v2 = vpop.f32.mrf.mxu2  ;;  %v673_v3 = vpop.f32.mrf.mxu3 }
  0xbc   : > { %v732_v8 = vpop.f32.mrf.mxu0  ;;  %v757_v9 = vpop.f32.mrf.mxu1  ;;  %v1021_v2 = vld [vmem:[%s1869_s8] sm:$0xf] }
  0xbd   : > { %v733_v10 = vadd.f32 %v1434_v6, %v732_v8  ;;  %v758_v11 = vadd.f32 %v1435_v7, %v757_v9  ;;  %v1047_v3 = vsel %vm935_vm2, %v1021_v2, 0  ;;  %v1339_v6 = vld [vmem:[%s1869_s8 + $0x8] sm:$0xf]  ;;  %v1341_v9 = vld [vmem:[%s1869_s8 + $0xc] sm:$0xf] }
  0xbe   : > { %v1068_v7 = vsel %vm935_vm2, %v1339_v6, 0 }
  0xbf   : > { %v811_v13 = vpack.c.bf16 %v733_v10, %v733_v10  ;;  %v812_v14 = vpack.c.bf16 %v758_v11, %v758_v11  ;;  %v1090_v10 = vsel %vm935_vm2, %v1341_v9, 0 }
  0xc0   : > { %1330 = vmatmul.msk.bf16.vlgmr.msrb.gmra.mxu2 %vm815_vm1, %v538_v4  ;;  %1331 = vmatmul.msk.bf16.vlgmr.msrb.gmra.mxu3 %vm815_vm1, %v539_v5  ;;  %v1336_v4 = vld [vmem:[%s1869_s8 + $0x4] sm:$0xf] }
  0xc1   : > { %v937_v16 = vsel %vm935_vm2, %v811_v13, 0  ;;  %v956_v17 = vsel %vm935_vm2, %v812_v14, 0  ;;  %v1028_v5 = vsel %vm935_vm2, %v1336_v4, 0 }
  0xc2   : > { %946 = vmatpush.bf16.msra.mxu0 %v937_v16  ;;  %965 = vmatpush.bf16.msra.mxu1 %v956_v17 }
  0xc3   : > { %v782_v15 = vpop.f32.mrf.mxu2  ;;  %v807_v24 = vpop.f32.mrf.mxu3 }
  0xc4   : > { %v783_v18 = vadd.f32 %v1436_v12, %v782_v15  ;;  %v734_v20 = vpop.f32.mrf.mxu0  ;;  %v759_v21 = vpop.f32.mrf.mxu1  ;;  %v808_v26 = vadd.f32 %v1437_v23, %v807_v24 }
  0xc6   : > { %v813_v19 = vpack.c.bf16 %v783_v18, %v783_v18  ;;  %v814_v27 = vpack.c.bf16 %v808_v26, %v808_v26  ;;  %1056 = vmatpush.bf16.msrb.mxu1 %v1047_v3  ;;  %1037 = vmatpush.bf16.msrb.mxu0 %v1028_v5 }
  0xc8   : > { %v975_v22 = vsel %vm935_vm2, %v813_v19, 0  ;;  %v994_v28 = vsel %vm935_vm2, %v814_v27, 0 }
  0xc9   : > { %984 = vmatpush.bf16.msra.mxu2 %v975_v22  ;;  %1003 = vmatpush.bf16.msra.mxu3 %v994_v28 }
  0xcb   : > { %v784_v25 = vpop.f32.mrf.mxu2  ;;  %v809_v29 = vpop.f32.mrf.mxu3 }
  0xcd   : > { %1077 = vmatpush.bf16.msrb.mxu2 %v1068_v7  ;;  %1099 = vmatpush.bf16.msrb.mxu3 %v1090_v10 }
 0x137   : > { %v831_v30 = vpop.f32.mrf.mxu0  ;;  %v850_v31 = vpop.f32.mrf.mxu1 }
 0x138   : > { %v892_v32 = vsel %vm815_vm1, %v831_v30, -inf  ;;  %v895_v35 = vsel %vm815_vm1, %v850_v31, -inf }
 0x139   : > { %893 = vmax.xlane.f32.xlu1 %v892_v32 }
 0x13f   : > { %v833_v33 = vpop.f32.mrf.mxu0  ;;  %v852_v34 = vpop.f32.mrf.mxu1 }
 0x141   : > { %896 = vmax.xlane.f32.xlu1 %v895_v35 }
 0x143   : > { %v869_v36 = vpop.f32.mrf.mxu2  ;;  %v888_v37 = vpop.f32.mrf.mxu3 }
 0x144   : > { %v898_v38 = vsel %vm815_vm1, %v869_v36, -inf  ;;  %v901_v41 = vsel %vm815_vm1, %v888_v37, -inf }
 0x145   : > { %899 = vmax.xlane.f32.xlu0 %v898_v38 }
 0x14b   : > { %v871_v39 = vpop.f32.mrf.mxu2  ;;  %v890_v40 = vpop.f32.mrf.mxu3 }
 0x14d   : > { %902 = vmax.xlane.f32.xlu0 %v901_v41  ;;  %v1438_v41 = vld [vmem:[%s1870_s9] ss:$0 sm:$0xff] }
 0x1ac   : > { %v894_v42 = vpop.xlane.xlu1 %893 }
 0x1ad   : > { %v904_v43 = vsub.f32 %v831_v30, %v894_v42 }
 0x1af   : > { %v908_v44 = vmul.f32 1.442695, %v904_v43 }
 0x1b1   : > { %1439 = vpow2.f32 %v908_v44 }
 0x1b4   : > { %v897_v45 = vpop.xlane.xlu1 %896 }
 0x1b5   : > { %v905_v46 = vsub.f32 %v850_v31, %v897_v45 }
 0x1b7   : > { %v1440_v47 = vpop.eup %1439  ;;  %v910_v48 = vmul.f32 1.442695, %v905_v46 }
 0x1b8   : > { %v928_v49 = vpack.c.bf16 %v1440_v47, %v1440_v47  ;;  %v900_v50 = vpop.xlane.xlu0 %899  ;;  %v916_v51 = vsel %vm815_vm1, %v1440_v47, 0.0 }
 0x1b9   : > { %1441 = vpow2.f32 %v910_v48  ;;  %v906_v52 = vsub.f32 %v869_v36, %v900_v50  ;;  %917 = vadd.xlane.f32.xlu0 %v916_v51 }
 0x1ba   : > { %1332 = vmatmul.msk.bf16.vlgmr.msra.gmra.mxu0 %vm815_vm1, %v928_v49 }
 0x1bb   : > { %v912_v53 = vmul.f32 1.442695, %v906_v52 }
 0x1bd   : > { %1443 = vpow2.f32 %v912_v53 }
 0x1bf   : > { %v1442_v54 = vpop.eup %1441 }
 0x1c0   : > { %v929_v55 = vpack.c.bf16 %v1442_v54, %v1442_v54  ;;  %v903_v56 = vpop.xlane.xlu0 %902  ;;  %v919_v57 = vsel %vm815_vm1, %v1442_v54, 0.0 }
 0x1c1   : > { %v907_v58 = vsub.f32 %v888_v37, %v903_v56  ;;  %920 = vadd.xlane.f32.xlu1 %v919_v57 }
 0x1c2   : > { %1333 = vmatmul.msk.bf16.vlgmr.msra.gmra.mxu1 %vm815_vm1, %v929_v55 }
 0x1c3   : > { %v1444_v59 = vpop.eup %1443  ;;  %v914_v60 = vmul.f32 1.442695, %v907_v58 }
 0x1c4   : > { %v930_v61 = vpack.c.bf16 %v1444_v59, %v1444_v59  ;;  %v922_v62 = vsel %vm815_vm1, %v1444_v59, 0.0 }
 0x1c5   : > { %1445 = vpow2.f32 %v914_v60  ;;  %923 = vadd.xlane.f32.xlu2 %v922_v62 }
 0x1c6   : > { %1334 = vmatmul.msk.bf16.vlgmr.msra.gmra.mxu2 %vm815_vm1, %v930_v61 }
 0x1cb   : > { %v1446_v63 = vpop.eup %1445 }
 0x1cc   : > { %v931_v0 = vpack.c.bf16 %v1446_v63, %v1446_v63  ;;  %v925_v1 = vsel %vm815_vm1, %v1446_v63, 0.0 }
 0x1cd   : > { %926 = vadd.xlane.f32.xlu2 %v925_v1 }
 0x1ce   : > { %1335 = vmatmul.msk.bf16.vlgmr.msra.gmra.mxu3 %vm815_vm1, %v931_v0 }
 0x22c   : > { %v918_v8 = vpop.xlane.xlu0 %917 }
 0x22d   : > { %1447 = vrcp.f32 %v918_v8 }
 0x233   : > { %v1448_v12 = vpop.eup %1447 }
 0x234   : > { %v921_v11 = vpop.xlane.xlu1 %920 }
 0x235   : > { %1449 = vrcp.f32 %v921_v11 }
 0x237   : > { %v948_v13 = vpop.f32.mrf.mxu0 }
 0x238   : > { %v1013_v14 = vmul.f32 %v1448_v12, %v948_v13  ;;  %v924_v16 = vpop.xlane.xlu2 %923 }
 0x239   : > { %1451 = vrcp.f32 %v924_v16 }
 0x23a   : > { %v1017_v15 = vpack.c.bf16 %v1013_v14, %v1013_v14 }
 0x23b   : > { %v1450_v17 = vpop.eup %1449 }
 0x23c   : > { %1338 = vmatmul.msk.bf16.vlgmr.msrb.gmra.mxu1 %vm815_vm1, %v1017_v15 }
 0x23f   : > { %v950_v18 = vpop.f32.mrf.mxu0  ;;  %v967_v19 = vpop.f32.mrf.mxu1 }
 0x240   : > { %v1014_v20 = vmul.f32 %v1450_v17, %v967_v19  ;;  %v927_v23 = vpop.xlane.xlu2 %926  ;;  %v1452_v24 = vpop.eup %1451 }
 0x241   : > { %1453 = vrcp.f32 %v927_v23 }
 0x242   : > { %v1018_v21 = vpack.c.bf16 %v1014_v20, %v1014_v20 }
 0x244   : > { %1337 = vmatmul.msk.bf16.vlgmr.msrb.gmra.mxu0 %vm815_vm1, %v1018_v21 }
 0x247   : > { %v969_v22 = vpop.f32.mrf.mxu1  ;;  %v1454_v28 = vpop.eup %1453 }
 0x249   : > { %v986_v25 = vpop.f32.mrf.mxu2 }
 0x24a   : > { %v1015_v26 = vmul.f32 %v1452_v24, %v986_v25 }
 0x24c   : > { %v1019_v27 = vpack.c.bf16 %v1015_v26, %v1015_v26 }
 0x24e   : > { %1340 = vmatmul.msk.bf16.vlgmr.msrb.gmra.mxu2 %vm815_vm1, %v1019_v27 }
 0x251   : > { %v988_v29 = vpop.f32.mrf.mxu2  ;;  %v1005_v30 = vpop.f32.mrf.mxu3 }
 0x252   : > { %v1016_v31 = vmul.f32 %v1454_v28, %v1005_v30 }
 0x254   : > { %v1020_v32 = vpack.c.bf16 %v1016_v31, %v1016_v31 }
 0x256   : > { %1342 = vmatmul.msk.bf16.vlgmr.msrb.gmra.mxu3 %vm815_vm1, %v1020_v32 }
 0x259   : > { %v1007_v33 = vpop.f32.mrf.mxu3 }
 0x2b9   : > { %v1058_v34 = vpop.f32.mrf.mxu1 }
 0x2c1   : > { %v1039_v35 = vpop.f32.mrf.mxu0  ;;  %v1060_v36 = vpop.f32.mrf.mxu1 }
 0x2c2   : > { %v1059_v39 = vadd.f32 %v1058_v34, %v1039_v35 }
 0x2c9   : > { %v1041_v37 = vpop.f32.mrf.mxu0 }
 0x2d1   : > { %v1079_v38 = vpop.f32.mrf.mxu2 }
 0x2d2   : > { %v1083_v40 = vadd.f32 %v1079_v38, %v1059_v39 }
 0x2d9   : > { %v1081_v42 = vpop.f32.mrf.mxu2  ;;  %v1101_v43 = vpop.f32.mrf.mxu3 }
 0x2da   : > { %v1105_v44 = vadd.f32 %v1101_v43, %v1083_v40 }
 0x2dc   : > { %v1110_v45 = vadd.f32 %v1438_v41, %v1105_v44 }
 0x2de   : > { %1111 = vst.msk [vmem:[%s385_s11] sm:$0xff] %vm444_vm0, %v1110_v45 }
 0x2df   : > { %1482 = shalt.err (!%p1479_p5)
}
 0x2e0   : > { %1371 = dma.vmem_to_hbm [thread:$0]  (%p1630_p4), %s1127_s12, 128, %s1129_s29, %s1113_s16  }
 0x2e1   : > { %v1103_v46 = vpop.f32.mrf.mxu3 }
 0x2e2 PF: > { %p1377_p6 = scmp.ge.s32.totalorder %s1533_s18, 2  ;;  %s1140_s20 = sand.u32 1, %s1513_s13  }
 0x2e3   : > { %s1141_s27 = scalar_lea.sflag [#allocation3], %s1140_s20 }
 0x2e4   : > { %p1374_p7 = pnand %p1377_p6, %p1637_p8 }
 0x2e6   : > { %p1375_p9 = pneg %p1374_p7 }
 0x2e8   : > { %1508 = dma.done.wait (%p1375_p9), %s1141_s27, 128  }
 0x2e9   : > { %1510 = vsyncadd (%p1375_p9), %s1141_s27, 4294967168  ;;  %s23_s18 = sadd.s32 1, %s1533_s18   ;;  %s1881_s28 = sld [smem:[#allocation5_spill]] }
 0x2ea   : > { %p20_p10 = scmp.ge.s32.totalorder %s23_s18, 4   ;;  %s1882_s15 = sld [smem:[#allocation8_spill]] }
 0x2eb   : > { %s1883_s16 = sld [smem:[#allocation6_spill]]  ;;  %s1885_s13 = smov %s1517_s14 }
 0x2ec   : > { %s1884_s17 = sld [smem:[#allocation7_spill]]  ;;  %22 = sbr.rel (!%p20_p10) target bundleno = 4 (0x4), region = 101 }
 0x2ef   : > { %s1886_s14 = smov %s1881_s28 }
 0x2f1   :  { %1147 = vsyncpa [#allocation3], 1 }
 0x2f2   :  { %1149 = vsyncpa [#allocation3 + $0x1], 1 }

</bundles_post_ra>
